<compile_context>
chip_gen: v7x
topology: tpu7x:2x2x1
jax: 0.10.0
libtpu: 0.0.40
codegen_flags: <defaults>
</compile_context>

<pallas_src>
import jax
import jax.numpy as jnp
from jax.experimental import pallas as pl
from jax.experimental.pallas import tpu as pltpu


def fused_kernel(slab_ref, o_ref):
    # slab_ref: (8, 128) f32, valid data in lanes 0-7 (zeros elsewhere), packed
    # in the wrapper with p = 4*o + 2*h + w:
    #   row 0: Xe[0, p] = x[0, p % 2]                       (x tiled along lanes)
    #   row 1: Xe[1, p] = x[1, p % 2]
    #   row 2: A[0, p]  = cw[p//4] * W[(p//2) % 2, 0]       (folded conv*linear weight)
    #   row 3: A[1, p]  = cw[p//4] * W[(p//2) % 2, 1]
    #   row 4: Bv[p]    = cw[p//4] * b[(p//2) % 2] + cb[p//4]
    #   rows 5-7 / lanes 8-127: zero padding
    # o_ref: (1, 128) f32 -- lane-dense; lanes 0-7 hold the flattened (o, h, w)
    # output, lanes 8-127 are zero (0*0 + 0*0 + 0).
    x0 = slab_ref[0:1, :]
    x1 = slab_ref[1:2, :]
    a0 = slab_ref[2:3, :]
    a1 = slab_ref[3:4, :]
    bb = slab_ref[4:5, :]
    o_ref[...] = a0 * x0 + a1 * x1 + bb   # pure VPU: 2 muls + 2 adds, one vreg row


@jax.jit
def model_forward(x1, lin_w, lin_b, conv_w, conv_b):
    """Fused permute -> linear -> permute -> 1x1 conv.

    x1     : (1, 2, 2) f32
    lin_w  : (2, 2) f32
    lin_b  : (2,)   f32
    conv_w : (2, 1, 1, 1) f32
    conv_b : (2,)   f32
    returns: (1, 1, 2, 2, 2) f32
    """
    X = x1.reshape(2, 2)            # X[c, w]
    W = lin_w                       # W[h, c]
    b = lin_b                       # (2,)
    cw = conv_w.reshape(2)          # (2,)
    cb = conv_b                     # (2,)

    # Constant folding (pure layout/const work, fused by XLA into one prep fusion):
    # A[c, p] = cw[p//4] * W[(p//2) % 2, c]            (2, 8)
    A = cw[:, None, None] * W[None, :, :]              # (o, h, c)
    A = jnp.transpose(A, (2, 0, 1)).reshape(2, 4)      # (c, 2*o + h)
    A = jnp.repeat(A, 2, axis=1)                       # (c, p)
    # Bv[p] = cw[p//4] * b[(p//2) % 2] + cb[p//4]      (1, 8)
    Bv = (cw[:, None] * b[None, :] + cb[:, None]).reshape(1, 4)
    Bv = jnp.repeat(Bv, 2, axis=1)                     # (1, p)
    # Xe[c, p] = x[c, p % 2]                           (2, 8) -- layout plumbing
    Xe = jnp.tile(X, (1, 4))

    # Single concat + single pad -> one (8, 128) f32 vreg tile (review items 2 & 4).
    core = jnp.concatenate([Xe, A, Bv], axis=0)        # (5, 8)
    slab = jnp.pad(core, ((0, 3), (0, 120)))           # (8, 128)

    vmem = pl.BlockSpec(memory_space=pltpu.MemorySpace.VMEM)
    out = pl.pallas_call(
        fused_kernel,
        out_shape=jax.ShapeDtypeStruct((1, 128), jnp.float32),
        in_specs=[vmem],
        out_specs=vmem,
    )(slab)

    # p = 4*o + 2*h + w  ->  (1, 1, o, h, w)
    return out[0, :8].reshape(1, 1, 2, 2, 2)


def reference_forward(x1, lin_w, lin_b, conv_w, conv_b):
    v1 = jnp.transpose(x1, (0, 2, 1))                     # (1, 2, 2)
    v2 = jnp.einsum("bij,kj->bik", v1, lin_w) + lin_b     # (1, 2, 2)
    v3 = jnp.transpose(v2, (0, 2, 1))                     # (C=1, H=2, W=2) slice
    cw = conv_w.reshape(2)
    out = cw[:, None, None] * v3[0][None, :, :] + conv_b[:, None, None]
    return out.reshape(1, 1, 2, 2, 2)


if __name__ == "__main__":
    key = jax.random.PRNGKey(0)
    k_x, k_w, k_b, k_cw, k_cb = jax.random.split(key, 5)

    x1 = jax.random.normal(k_x, (1, 2, 2), dtype=jnp.float32)
    lin_w = jax.random.normal(k_w, (2, 2), dtype=jnp.float32) * 0.5
    lin_b = jax.random.normal(k_b, (2,), dtype=jnp.float32) * 0.5
    conv_w = jax.random.normal(k_cw, (2, 1, 1, 1), dtype=jnp.float32) * 0.5
    conv_b = jax.random.normal(k_cb, (2,), dtype=jnp.float32) * 0.5

    out = model_forward(x1, lin_w, lin_b, conv_w, conv_b)
    jax.block_until_ready(out)

    ref = reference_forward(x1, lin_w, lin_b, conv_w, conv_b)
    assert out.shape == (1, 1, 2, 2, 2), out.shape
    assert jnp.allclose(out, ref, atol=1e-5, rtol=1e-5), (out, ref)

    print("KERNEL_OK")
</pallas_src>

<mosaic_0001>
module attributes {stable_mosaic.version = 11 : i64} {
  func.func @fused_kernel(%arg0: memref<8x128xf32, #tpu.memory_space<vmem>>, %arg1: memref<1x128xf32, #tpu.memory_space<vmem>>) attributes {dimension_semantics = [], scalar_prefetch = 0 : i64, scratch_operands = 0 : i64, tpu.core_type = #tpu.core_type<tc>} {
    %c0 = arith.constant 0 : index
    %c0_0 = arith.constant 0 : index
    %0 = vector.load %arg0[%c0, %c0_0] : memref<8x128xf32, #tpu.memory_space<vmem>>, vector<1x128xf32>
    %c1 = arith.constant 1 : index
    %c0_1 = arith.constant 0 : index
    %1 = vector.load %arg0[%c1, %c0_1] : memref<8x128xf32, #tpu.memory_space<vmem>>, vector<1x128xf32>
    %c2 = arith.constant 2 : index
    %c0_2 = arith.constant 0 : index
    %2 = vector.load %arg0[%c2, %c0_2] : memref<8x128xf32, #tpu.memory_space<vmem>>, vector<1x128xf32>
    %c3 = arith.constant 3 : index
    %c0_3 = arith.constant 0 : index
    %3 = vector.load %arg0[%c3, %c0_3] : memref<8x128xf32, #tpu.memory_space<vmem>>, vector<1x128xf32>
    %c4 = arith.constant 4 : index
    %c0_4 = arith.constant 0 : index
    %4 = vector.load %arg0[%c4, %c0_4] : memref<8x128xf32, #tpu.memory_space<vmem>>, vector<1x128xf32>
    %5 = arith.mulf %2, %0 : vector<1x128xf32>
    %6 = arith.mulf %3, %1 : vector<1x128xf32>
    %7 = arith.addf %5, %6 : vector<1x128xf32>
    %8 = arith.addf %7, %4 : vector<1x128xf32>
    %c0_5 = arith.constant 0 : index
    %c0_6 = arith.constant 0 : index
    %9 = vector.load %arg1[%c0_5, %c0_6] : memref<1x128xf32, #tpu.memory_space<vmem>>, vector<1x128xf32>
    tpu.vector_store %arg1[%c0_5, %c0_6], %8 {strides = array<i32>} : memref<1x128xf32, #tpu.memory_space<vmem>>, vector<1x128xf32>,
    return
  }
}

</mosaic_0001>

<bundles_post_ra>
// kernel: squeeze.1
= control target key start
LH: loop header
LB: loop body
LE: loop exit
PB: predicated region body
PF: predicated region fallthrough
CT: control target
= control target key end

     0   :  { %s110_s0 = inlined_call_operand.vmem [shape: f32[8], index: 0, kind: input, shape index: {}]   ;;  %s111_s1 = inlined_call_operand.hbm [shape: f32[1,1,2,2,2], index: 1, kind: output, shape index: {}]  }
   0x1   :  { %v5_v0 = vld [vmem:[%s110_s0] sm:$0x1] }
   0x2   :  { %6 = vst [vmem:[#allocation3] sm:$0x1] %v5_v0 }
   0x3   :  { %2 = vsyncpa [#allocation1], 0  ;;  %vm8_vm0 = vcmask 15360   ;;  %s77_s0 = smov 126   ;;  %s78_s8 = smov 122  }
   0x4   :  { %s79_s9 = smov 124   ;;  %s80_s10 = smov [#allocation0]  }
   0x5   :  { %s43_s11 = sshll.u32 %s80_s10, 4  ;;  %s44_s11 = int_to_ptr.vmem [resolvable:$true] %s43_s11 }
   0x6   :  { %s53_s12 = scalar_lea.vmem %s44_s11, 64  ;;  %p58_p1 = scmp.lt.s32.totalorder %s44_s11, %s44_s11 }
   0x7   :  { %p54_p0 = scmp.ne.s32.totalorder %s44_s11, %s53_s12  ;;  %p59_p2 = scmp.lt.s32.totalorder %s53_s12, %s53_s12 }
   0x9   :  { %v10_v1 = vld [vmem:[#allocation3] sm:$0x1]   ;;  %p60_p3 = por %p59_p2, %p58_p1 }
   0xa   :  { %v22_v2 = vld [vmem:[#allocation3] sm:$0x1]   ;;  %11 = vrot.lane.b32.xlu0 %v10_v1, %s77_s0 }
   0xb   :  { %23 = vrot.lane.b32.xlu1 %v22_v2, %s78_s8  ;;  %v7_v3 = vld [vmem:[#allocation3] sm:$0x1]   ;;  %p61_p4 = pnand %p60_p3, %p54_p0 }
   0xc   :  { %v16_v4 = vld [vmem:[#allocation3] sm:$0x1]   ;;  %9 = vst.msk [vmem:[#allocation2] sm:$0x1] %vm8_vm0, %v7_v3  }
   0xe   :  { %17 = vrot.lane.b32.xlu0 %v16_v4, %s79_s9 }
  0x7c   :  { %v12_v5 = vpop.permute.xlu0 %11  }
  0x7d   :  { %v24_v6 = vpop.permute.xlu1 %23   ;;  %15 = vst.msk [vmem:[#allocation2 + $0x1] sm:$0x1] %vm8_vm0, %v12_v5  }
  0x7e   :  { %27 = vst.msk [vmem:[#allocation2 + $0x9] sm:$0x1] %vm8_vm0, %v24_v6  }
  0x80   :  { %v18_v7 = vpop.permute.xlu0 %17  }
  0x81   :  { %21 = vst.msk [vmem:[#allocation2 + $0x8] sm:$0x1] %vm8_vm0, %v18_v7  }
  0x84   :  { %v31_v8 = vld [vmem:[#allocation2] sm:$0x3] }
  0x85   :  { %33 = vst [vmem:[#allocation0] sm:$0x3] %v31_v8 }
  0x88   :  { %v35_v9 = vld [vmem:[#allocation2 + $0x8] sm:$0x3] }
  0x89   :  { %38 = vst [vmem:[#allocation0 + $0x2] sm:$0x3] %v35_v9 }
  0x8a   :  { %64 = shalt.err (!%p61_p4)
}
  0x8b   :  { %s65_s15 = scalar_lea.hbm %s111_s1, 64 }
  0x8c   :  { %p66_p5 = scmp.ne.s32.totalorder %s111_s1, %s65_s15  ;;  %p69_p6 = scmp.lt.u32.totalorder %s65_s15, %s111_s1 }
  0x8e   :  { %p71_p7 = pnand %p69_p6, %p66_p5 }
  0x90   :  { %74 = shalt.err (!%p71_p7)
}
  0x91   :  { %46 = dma.vmem_to_hbm [thread:$0]  %s44_s11, 64, %s111_s1, [#allocation1]  }
  0x92   :  { %75 = dma.done.wait [#allocation1], 64  }
  0x93   :  { %76 = vsyncadd [#allocation1], 4294967232 }
  0x94   :  { %48 = vsyncpa [#allocation1], 1 }

// kernel: model_forward.1
= control target key start
LH: loop header
LB: loop body
LE: loop exit
PB: predicated region body
PF: predicated region fallthrough
CT: control target
= control target key end

     0   :  { %s50_s0 = inlined_call_operand.vmem [shape: f32[8,128], index: 0, kind: input, shape index: {}]   ;;  %s51_s1 = inlined_call_operand.vmem [shape: f32[1,128], index: 1, kind: output, shape index: {}]  }
   0x1   :  { %v8_v0 = vld [vmem:[%s50_s0] sm:$0x1]  ;;  %v9_v1 = vld [vmem:[%s50_s0 + $0x1] sm:$0x1]  ;;  %v10_v2 = vld [vmem:[%s50_s0 + $0x2] sm:$0x1] }
   0x2   :  { %v11_v3 = vld [vmem:[%s50_s0 + $0x3] sm:$0x1]  ;;  %v13_v4 = vmul.f32 %v10_v2, %v8_v0  ;;  %v12_v6 = vld [vmem:[%s50_s0 + $0x4] sm:$0x1] }
   0x3   :  { %v14_v5 = vmul.f32 %v11_v3, %v9_v1 }
   0x5   :  { %v15_v7 = vadd.f32 %v14_v5, %v13_v4 }
   0x7   :  { %v16_v8 = vadd.f32 %v15_v7, %v12_v6 }
   0x9   :  { %17 = vst [vmem:[%s51_s1] sm:$0x1] %v16_v8 }

</bundles_post_ra>
